<compile_context>
chip_gen: v7x
topology: tpu7x:2x2x1
jax: 0.10.0
libtpu: 0.0.40
codegen_flags: <defaults>
</compile_context>

<pallas_src>
import functools

import jax
import jax.numpy as jnp
from jax.experimental import pallas as pl
from jax.experimental.pallas import tpu as pltpu


def _round_up(n, m):
    return ((n + m - 1) // m) * m


def _sigmoid(x):
    # sigmoid(z) = 0.5 * tanh(0.5 * z) + 0.5 : single EUP op (tanh); the mul/add
    # land on the VALU slot, which has plenty of slack in this kernel.
    return 0.5 * jnp.tanh(0.5 * x) + 0.5


def _default_act_dtype():
    # bf16 EUP/VPU exists on v6e/v7x; v5e (and older) lack it -> keep f32 there.
    try:
        kind = jax.devices()[0].device_kind.lower()
    except Exception:
        return jnp.float32
    if any(v in kind for v in ("v2", "v3", "v4", "v5")):
        return jnp.float32
    return jnp.bfloat16


def autoencoder_kernel(x_ref, wg_ref, bg_ref, wh_ref, bh_ref, o_ref, *, act_dtype):
    # x_ref : (TB, Q)  f32     wg_ref: (Q, Kp) bf16   bg_ref: (1, Kp) f32
    # wh_ref: (Kp, Q)  bf16    bh_ref: (1, Q)  f32    o_ref : (TB, Q) out_dtype
    # In-kernel f32 -> bf16 cast (cheap VALU work) instead of a host-side HBM pass.
    x = x_ref[...].astype(wg_ref.dtype)

    # g: Linear(Q -> Kp) + sigmoid  (bf16 MXU matmul, f32 accumulate, f32 bias).
    pre_h = jnp.dot(x, wg_ref[...], preferred_element_type=jnp.float32) + bg_ref[...]
    # Hidden activation's transcendental in act_dtype (bf16 on v6e/v7x): h is
    # immediately re-cast to bf16 for the second matmul, so no extra accuracy loss.
    h = _sigmoid(pre_h.astype(act_dtype)).astype(wh_ref.dtype)

    # h: Linear(Kp -> Q) + sigmoid  (output activation kept in f32 for accuracy).
    pre_o = jnp.dot(h, wh_ref[...], preferred_element_type=jnp.float32) + bh_ref[...]
    o_ref[...] = _sigmoid(pre_o).astype(o_ref.dtype)


def prepare_params(w_g, b_g, w_h, b_h, *, dtype=jnp.bfloat16):
    """One-time host-side prep: transpose, zero-pad K to a multiple of 128, cast.

    w_g : (K, Q)  PyTorch layout (out_features, in_features)
    b_g : (K,)
    w_h : (Q, K)
    b_h : (Q,)
    """
    K, Q = w_g.shape
    Kp = max(128, _round_up(K, 128))

    wg_t = jnp.zeros((Q, Kp), dtype).at[:, :K].set(w_g.T.astype(dtype))      # (Q, Kp)
    bg2 = jnp.zeros((1, Kp), jnp.float32).at[:, :K].set(b_g.astype(jnp.float32))
    wh_t = jnp.zeros((Kp, Q), dtype).at[:K, :].set(w_h.T.astype(dtype))      # (Kp, Q)
    bh2 = b_h.reshape(1, Q).astype(jnp.float32)
    return wg_t, bg2, wh_t, bh2


def autoencoder_forward(x, params, *, batch_tile=2048, out_dtype=jnp.bfloat16,
                        act_dtype=None):
    """Fused forward: sigmoid(sigmoid(x @ W_g^T + b_g) @ W_h^T + b_h).

    x      : (B, Q) float32 (cast to bf16 inside the kernel)
    params : output of prepare_params (pre-transposed / padded / bf16 weights)
    returns: (B, Q) array of `out_dtype` (bf16 by default to halve writeback HBM)
    """
    wg_t, bg2, wh_t, bh2 = params
    B, Q = x.shape
    Kp = wg_t.shape[1]

    if act_dtype is None:
        act_dtype = _default_act_dtype()

    # Batch tiling:
    #  * B <= 32      : single full-batch block (full-dim block is always legal).
    #  * B  > 32      : 16-row-aligned tiles (bf16 output packs 2 rows/sublane),
    #                   capped at ~ceil(B/2) so there are always >= 2 grid steps
    #                   (lets the "parallel" axis shard across v7x's two TCs),
    #                   and at batch_tile for very large batches.
    if B <= 32:
        TB = B
    else:
        TB = min(_round_up(batch_tile, 16), _round_up(-(-B // 2), 16))
    grid = (pl.cdiv(B, TB),)

    w_itm = jnp.dtype(wg_t.dtype).itemsize
    out_itm = jnp.dtype(out_dtype).itemsize
    cost = pl.CostEstimate(
        flops=4 * B * Q * Kp,                           # two matmuls
        transcendentals=B * (Kp + Q),                   # one tanh per hidden/output elem
        bytes_accessed=(B * Q * x.dtype.itemsize        # x (f32, read once in-kernel)
                        + 2 * Q * Kp * w_itm            # resident weights
                        + (Kp + Q) * 4                  # biases
                        + B * Q * out_itm),             # output (bf16)
    )

    out = pl.pallas_call(
        functools.partial(autoencoder_kernel, act_dtype=act_dtype),
        out_shape=jax.ShapeDtypeStruct((B, Q), out_dtype),
        grid=grid,
        in_specs=[
            pl.BlockSpec((TB, Q), lambda i: (i, 0)),    # x: f32, tiled over batch
            pl.BlockSpec((Q, Kp), lambda i: (0, 0)),    # weights resident across grid
            pl.BlockSpec((1, Kp), lambda i: (0, 0)),
            pl.BlockSpec((Kp, Q), lambda i: (0, 0)),
            pl.BlockSpec((1, Q), lambda i: (0, 0)),
        ],
        out_specs=pl.BlockSpec((TB, Q), lambda i: (i, 0)),
        compiler_params=pltpu.CompilerParams(
            dimension_semantics=("parallel",),
            vmem_limit_bytes=32 << 20,
        ),
        cost_estimate=cost,
    )(x, wg_t, bg2, wh_t, bh2)

    return out


def reference_forward(x, w_g, b_g, w_h, b_h):
    h = jax.nn.sigmoid(x @ w_g.T + b_g)
    return jax.nn.sigmoid(h @ w_h.T + b_h)


if __name__ == "__main__":
    # Shapes consistent with the module: num_question=256, k=100 (default), batch=8.
    B, Q, K = 8, 256, 100

    key = jax.random.PRNGKey(0)
    kx, kwg, kbg, kwh, kbh = jax.random.split(key, 5)

    x = jax.random.uniform(kx, (B, Q), dtype=jnp.float32)  # user vectors in [0, 1)

    # Deterministic parameter init (uniform like PyTorch's default Linear init bound).
    bound_g = 1.0 / (Q ** 0.5)
    bound_h = 1.0 / (K ** 0.5)
    w_g = jax.random.uniform(kwg, (K, Q), jnp.float32, -bound_g, bound_g)
    b_g = jax.random.uniform(kbg, (K,), jnp.float32, -bound_g, bound_g)
    w_h = jax.random.uniform(kwh, (Q, K), jnp.float32, -bound_h, bound_h)
    b_h = jax.random.uniform(kbh, (Q,), jnp.float32, -bound_h, bound_h)

    # One-time prep (hoisted off the per-call path).
    params = prepare_params(w_g, b_g, w_h, b_h)
    params = jax.tree_util.tree_map(jax.block_until_ready, params)

    out = autoencoder_forward(x, params)
    out = jax.block_until_ready(out)

    ref = reference_forward(x, w_g, b_g, w_h, b_h)
    assert out.shape == (B, Q)
    # bf16 matmul inputs + bf16 output -> compare vs f32 reference with loose tol.
    err = jnp.max(jnp.abs(out.astype(jnp.float32) - ref))
    assert jnp.allclose(out.astype(jnp.float32), ref, atol=2e-2, rtol=0.0), float(err)

    # TODO(synk): get_weight_norm() is a training-time scalar reduction, not part of the
    # forward pass; left to plain jnp (no kernel needed).

    print("KERNEL_OK")
</pallas_src>

<mosaic_0001>
module attributes {stable_mosaic.version = 11 : i64} {
  func.func @autoencoder_kernel(%arg0: i32, %arg1: memref<8x256xf32, #tpu.memory_space<vmem>>, %arg2: memref<256x128xbf16, #tpu.memory_space<vmem>>, %arg3: memref<1x128xf32, #tpu.memory_space<vmem>>, %arg4: memref<128x256xbf16, #tpu.memory_space<vmem>>, %arg5: memref<1x256xf32, #tpu.memory_space<vmem>>, %arg6: memref<8x256xbf16, #tpu.memory_space<vmem>>) attributes {dimension_semantics = [#tpu.dimension_semantics<parallel>], iteration_bounds = array<i64: 1>, scalar_prefetch = 0 : i64, scratch_operands = 0 : i64, tpu.core_type = #tpu.core_type<tc>, window_params = [{transform_indices = @transform_0, window_bounds = array<i64: 8, 256>}, {pipeline_mode = #tpu.pipeline_mode<synchronous>, transform_indices = @transform_1, window_bounds = array<i64: 256, 128>}, {pipeline_mode = #tpu.pipeline_mode<synchronous>, transform_indices = @transform_2, window_bounds = array<i64: 1, 128>}, {pipeline_mode = #tpu.pipeline_mode<synchronous>, transform_indices = @transform_3, window_bounds = array<i64: 128, 256>}, {pipeline_mode = #tpu.pipeline_mode<synchronous>, transform_indices = @transform_4, window_bounds = array<i64: 1, 256>}, {transform_indices = @transform_5, window_bounds = array<i64: 8, 256>}]} {
    %c0 = arith.constant 0 : index
    %c0_0 = arith.constant 0 : index
    %0 = vector.load %arg1[%c0, %c0_0] : memref<8x256xf32, #tpu.memory_space<vmem>>, vector<8x256xf32>
    %1 = arith.truncf %0 : vector<8x256xf32> to vector<8x256xbf16>
    %c0_1 = arith.constant 0 : index
    %c0_2 = arith.constant 0 : index
    %2 = vector.load %arg2[%c0_1, %c0_2] : memref<256x128xbf16, #tpu.memory_space<vmem>>, vector<256x128xbf16>
    %cst = arith.constant dense<0.000000e+00> : vector<8x128xf32>
    %3 = tpu.matmul %1, %2, %cst {dimension_numbers = #tpu.dot_dimension_numbers<[1], [0], [0], [1], [0, 0, 1, 1], [], []>} : vector<8x256xbf16>, vector<256x128xbf16>, vector<8x128xf32> -> vector<8x128xf32>
    %c0_3 = arith.constant 0 : index
    %c0_4 = arith.constant 0 : index
    %4 = vector.load %arg3[%c0_3, %c0_4] : memref<1x128xf32, #tpu.memory_space<vmem>>, vector<1x128xf32>
    %5 = vector.broadcast %4 : vector<1x128xf32> to vector<8x128xf32>
    %6 = arith.addf %3, %5 : vector<8x128xf32>
    %7 = arith.truncf %6 : vector<8x128xf32> to vector<8x128xbf16>
    %cst_5 = arith.constant 5.000000e-01 : bf16
    %8 = vector.broadcast %cst_5 : bf16 to vector<8x128xbf16>
    %9 = arith.mulf %8, %7 : vector<8x128xbf16>
    %10 = math.tanh %9 : vector<8x128xbf16>
    %cst_6 = arith.constant 5.000000e-01 : bf16
    %11 = vector.broadcast %cst_6 : bf16 to vector<8x128xbf16>
    %12 = arith.mulf %11, %10 : vector<8x128xbf16>
    %cst_7 = arith.constant 5.000000e-01 : bf16
    %13 = vector.broadcast %cst_7 : bf16 to vector<8x128xbf16>
    %14 = arith.addf %12, %13 : vector<8x128xbf16>
    %c0_8 = arith.constant 0 : index
    %c0_9 = arith.constant 0 : index
    %15 = vector.load %arg4[%c0_8, %c0_9] : memref<128x256xbf16, #tpu.memory_space<vmem>>, vector<128x256xbf16>
    %cst_10 = arith.constant dense<0.000000e+00> : vector<8x256xf32>
    %16 = tpu.matmul %14, %15, %cst_10 {dimension_numbers = #tpu.dot_dimension_numbers<[1], [0], [0], [1], [0, 0, 1, 1], [], []>} : vector<8x128xbf16>, vector<128x256xbf16>, vector<8x256xf32> -> vector<8x256xf32>
    %c0_11 = arith.constant 0 : index
    %c0_12 = arith.constant 0 : index
    %17 = vector.load %arg5[%c0_11, %c0_12] : memref<1x256xf32, #tpu.memory_space<vmem>>, vector<1x256xf32>
    %18 = vector.broadcast %17 : vector<1x256xf32> to vector<8x256xf32>
    %19 = arith.addf %16, %18 : vector<8x256xf32>
    %cst_13 = arith.constant 5.000000e-01 : f32
    %20 = vector.broadcast %cst_13 : f32 to vector<8x256xf32>
    %21 = arith.mulf %20, %19 : vector<8x256xf32>
    %22 = math.tanh %21 : vector<8x256xf32>
    %cst_14 = arith.constant 5.000000e-01 : f32
    %23 = vector.broadcast %cst_14 : f32 to vector<8x256xf32>
    %24 = arith.mulf %23, %22 : vector<8x256xf32>
    %cst_15 = arith.constant 5.000000e-01 : f32
    %25 = vector.broadcast %cst_15 : f32 to vector<8x256xf32>
    %26 = arith.addf %24, %25 : vector<8x256xf32>
    %27 = arith.truncf %26 : vector<8x256xf32> to vector<8x256xbf16>
    %c0_16 = arith.constant 0 : index
    %c0_17 = arith.constant 0 : index
    %28 = vector.load %arg6[%c0_16, %c0_17] : memref<8x256xbf16, #tpu.memory_space<vmem>>, vector<8x256xbf16>
    tpu.vector_store %arg6[%c0_16, %c0_17], %27 {strides = array<i32>} : memref<8x256xbf16, #tpu.memory_space<vmem>>, vector<8x256xbf16>,
    return
  }
  func.func @transform_0(%arg0: i32) -> (i32, i32) {
    %c0_i32 = arith.constant 0 : i32
    %c0_i32_0 = arith.constant 0 : i32
    return %arg0, %c0_i32 : i32, i32
  }
  func.func @transform_1(%arg0: i32) -> (i32, i32) {
    %c0_i32 = arith.constant 0 : i32
    %c0_i32_0 = arith.constant 0 : i32
    %c0_i32_1 = arith.constant 0 : i32
    return %c0_i32, %c0_i32_0 : i32, i32
  }
  func.func @transform_2(%arg0: i32) -> (i32, i32) {
    %c0_i32 = arith.constant 0 : i32
    %c0_i32_0 = arith.constant 0 : i32
    %c0_i32_1 = arith.constant 0 : i32
    return %c0_i32, %c0_i32_0 : i32, i32
  }
  func.func @transform_3(%arg0: i32) -> (i32, i32) {
    %c0_i32 = arith.constant 0 : i32
    %c0_i32_0 = arith.constant 0 : i32
    %c0_i32_1 = arith.constant 0 : i32
    return %c0_i32, %c0_i32_0 : i32, i32
  }
  func.func @transform_4(%arg0: i32) -> (i32, i32) {
    %c0_i32 = arith.constant 0 : i32
    %c0_i32_0 = arith.constant 0 : i32
    %c0_i32_1 = arith.constant 0 : i32
    return %c0_i32, %c0_i32_0 : i32, i32
  }
  func.func @transform_5(%arg0: i32) -> (i32, i32) {
    %c0_i32 = arith.constant 0 : i32
    %c0_i32_0 = arith.constant 0 : i32
    return %arg0, %c0_i32 : i32, i32
  }
}

</mosaic_0001>

<bundles_post_ra>
// kernel: tpu_custom_call.1
= control target key start
LH: loop header
LB: loop body
LE: loop exit
PB: predicated region body
PF: predicated region fallthrough
CT: control target
= control target key end

     0   :  { %10 = vsyncpa [#allocation3], 0  ;;  %s727_s0 = inlined_call_operand.hbm [shape: f32[8,256], index: 0, kind: input, shape index: {}]   ;;  %s728_s1 = inlined_call_operand.hbm [shape: bf16[256,128], index: 1, kind: input, shape index: {}]   ;;  %s729_s2 = inlined_call_operand.vmem [shape: f32[1,128], index: 2, kind: input, shape index: {}]   ;;  %s730_s3 = inlined_call_operand.hbm [shape: bf16[128,256], index: 3, kind: input, shape index: {}]   ;;  %s731_s4 = inlined_call_operand.vmem [shape: f32[1,256], index: 4, kind: input, shape index: {}]   ;;  %s732_s5 = inlined_call_operand.hbm [shape: bf16[8,256], index: 5, kind: output, shape index: {}]  }
   0x1   :  { %11 = vsyncpa [#allocation6], 0 }
   0x2   :  { %12 = vsyncpa [#allocation4], 0  ;;  %s634_s18 = smov [#allocation5]   ;;  %s540_s22 = scalar_lea.hbm %s728_s1, 2048 }
   0x3   :  { %s28_s19 = sshll.u32 %s634_s18, 4  ;;  %p541_p0 = scmp.ne.s32.totalorder %s728_s1, %s540_s22  ;;  %s29_s19 = int_to_ptr.vmem [resolvable:$true] %s28_s19 }
   0x4   :  { %p544_p1 = scmp.lt.u32.totalorder %s540_s22, %s728_s1 }
   0x6   :  { %p546_p2 = pnand %p544_p1, %p541_p0 }
   0x8   :  { %549 = shalt.err (!%p546_p2)
}
   0x9   :  { %s550_s27 = scalar_lea.vmem %s29_s19, 2048  ;;  %p555_p4 = scmp.lt.s32.totalorder %s29_s19, %s29_s19 }
   0xa   :  { %p551_p3 = scmp.ne.s32.totalorder %s29_s19, %s550_s27  ;;  %p556_p5 = scmp.lt.s32.totalorder %s550_s27, %s550_s27 }
   0xc   :  { %p557_p6 = por %p556_p5, %p555_p4 }
   0xe   :  { %p558_p7 = pnand %p557_p6, %p551_p3 }
  0x10   :  { %561 = shalt.err (!%p558_p7)
}
  0x11   :  { %s635_s28 = smov 64   ;;  %s636_s29 = smov 4  }
  0x12   :  { %34 = dma.hbm_to_vmem [thread:$0]  %s728_s1, 2048, %s29_s19, [#allocation6], %s635_s28, %s635_s28, %s636_s29  }
  0x13   :  { %s637_s7 = smov [#allocation2]   ;;  %s638_s9 = smov [#allocation7]  }
  0x14   :  { %s19_s8 = sshll.u32 %s637_s7, 4  ;;  %s42_s10 = sshll.u32 %s638_s9, 4  ;;  %s20_s8 = int_to_ptr.vmem [resolvable:$true] %s19_s8  ;;  %s43_s10 = int_to_ptr.vmem [resolvable:$true] %s42_s10 }
  0x15   :  { %s562_s13 = scalar_lea.hbm %s727_s0, 256 }
  0x16   :  { %p563_p8 = scmp.ne.s32.totalorder %s727_s0, %s562_s13  ;;  %p566_p9 = scmp.lt.u32.totalorder %s562_s13, %s727_s0 }
  0x18   :  { %p568_p10 = pnand %p566_p9, %p563_p8 }
  0x1a   :  { %571 = shalt.err (!%p568_p10)
}
  0x1b   :  { %s572_s1 = scalar_lea.vmem %s20_s8, 256  ;;  %p577_p12 = scmp.lt.s32.totalorder %s20_s8, %s20_s8 }
  0x1c   :  { %p573_p11 = scmp.ne.s32.totalorder %s20_s8, %s572_s1  ;;  %p578_p13 = scmp.lt.s32.totalorder %s572_s1, %s572_s1 }
  0x1e   :  { %p579_p0 = por %p578_p13, %p577_p12 }
  0x20   :  { %p580_p1 = pnand %p579_p0, %p573_p11 }
  0x22   :  { %583 = shalt.err (!%p580_p1)
}
  0x23   :  { %22 = dma.hbm_to_vmem [thread:$0]  %s727_s0, 256, %s20_s8, [#allocation3]  }
  0x24   :  { %s584_s22 = scalar_lea.hbm %s730_s3, 2048 }
  0x25   :  { %p585_p2 = scmp.ne.s32.totalorder %s730_s3, %s584_s22  ;;  %p588_p3 = scmp.lt.u32.totalorder %s584_s22, %s730_s3 }
  0x27   :  { %p590_p4 = pnand %p588_p3, %p585_p2 }
  0x29   :  { %593 = shalt.err (!%p590_p4)
}
  0x2a   :  { %s594_s27 = scalar_lea.vmem %s43_s10, 2048  ;;  %p599_p6 = scmp.lt.s32.totalorder %s43_s10, %s43_s10 }
  0x2b   :  { %p595_p5 = scmp.ne.s32.totalorder %s43_s10, %s594_s27  ;;  %p600_p7 = scmp.lt.s32.totalorder %s594_s27, %s594_s27 }
  0x2d   :  { %p601_p8 = por %p600_p7, %p599_p6 }
  0x2f   :  { %p602_p9 = pnand %p601_p8, %p595_p5 }
  0x31   :  { %605 = shalt.err (!%p602_p9)
}
  0x32   :  { %s639_s0 = smov 128   ;;  %s640_s28 = smov 8  }
  0x33   :  { %48 = dma.hbm_to_vmem [thread:$0]  %s730_s3, 2048, %s43_s10, [#allocation6], %s639_s0, %s639_s0, %s640_s28  }
  0x34   :  { %628 = dma.done.wait [#allocation3], 256  }
  0x35   :  { %629 = vsyncadd [#allocation3], 4294967040 }
  0x36   :  { %630 = dma.done.wait [#allocation6], 4096  }
  0x37   :  { %631 = vsyncadd [#allocation6], 4294963200  ;;  %v494_v0 = vld [vmem:[#allocation5 + $0x40] sm:$0xff]   ;;  %v496_v2 = vld [vmem:[#allocation5 + $0x48] sm:$0xff]   ;;  %v641_v33 = vmov 0   ;;  %v264_v49 = vlaneseq }
  0x38   :  { %v495_v1 = vld [vmem:[#allocation5] sm:$0xff]   ;;  %463 = vmatprep.subr.bf16.mxu0 %v494_v0  ;;  %v497_v3 = vld [vmem:[#allocation5 + $0x8] sm:$0xff]   ;;  %v498_v4 = vld [vmem:[#allocation5 + $0x50] sm:$0xff]   ;;  %386 = vmatprep.mubr.bf16.mxu1 %v641_v33 }
  0x39   :  { %464 = vmatpush3.bf16.msra.mxu0 %v495_v1  ;;  %v499_v5 = vld [vmem:[#allocation5 + $0x10] sm:$0xff]   ;;  %v500_v6 = vld [vmem:[#allocation5 + $0x58] sm:$0xff]   ;;  %v502_v8 = vld [vmem:[#allocation5 + $0x60] sm:$0xff]   ;;  %v265_v50 = vshrl.u32 %v264_v49, 7 }
  0x3a   :  { %465 = vmatprep.subr.bf16.mxu0 %v496_v2  ;;  %v501_v7 = vld [vmem:[#allocation5 + $0x18] sm:$0xff]   ;;  %v503_v9 = vld [vmem:[#allocation5 + $0x20] sm:$0xff]   ;;  %v504_v10 = vld [vmem:[#allocation5 + $0x68] sm:$0xff]  }
  0x3b   :  { %v63_v11 = vld [vmem:[#allocation2 + $0x8] sm:$0xff]  ;;  %v505_v12 = vld [vmem:[#allocation5 + $0x28] sm:$0xff]   ;;  %v506_v16 = vld [vmem:[#allocation5 + $0x70] sm:$0xff]   ;;  %v266_v51 = vsub.s32 0, %v265_v50  ;;  %v270_v53 = vsub.s32 1, %v265_v50 }
  0x3c   :  { %v65_v13 = vpack.c.bf16 %v63_v11, %v63_v11  ;;  %v510_v14 = vld [vmem:[#allocation7 + $0x4] ss:$8 sps:$4 sm:$0xff]   ;;  %v512_v15 = vld [vmem:[#allocation7] ss:$8 sps:$4 sm:$0xff]   ;;  %v513_v17 = vld [vmem:[#allocation7 + $0x14] ss:$8 sps:$4 sm:$0xff]  }
  0x3d   :  { %466 = vmatpush3.bf16.msra.mxu0 %v497_v3  ;;  %v515_v18 = vld [vmem:[#allocation7 + $0x10] ss:$8 sps:$4 sm:$0xff]   ;;  %354 = vmatprep.subr.bf16.mxu1 %v510_v14  ;;  %v516_v24 = vld [vmem:[#allocation7 + $0x24] ss:$8 sps:$4 sm:$0xff]   ;;  %v518_v25 = vld [vmem:[#allocation7 + $0x20] ss:$8 sps:$4 sm:$0xff]  }
  0x3e   :  { %467 = vmatprep.subr.bf16.mxu0 %v498_v4  ;;  %233 = vmatprep.mubr.bf16.mxu0 %v65_v13  ;;  %v507_v19 = vld [vmem:[#allocation5 + $0x30] sm:$0xff]   ;;  %v508_v20 = vld [vmem:[#allocation5 + $0x78] sm:$0xff]   ;;  %v522_v28 = vld [vmem:[#allocation7 + $0x44] ss:$8 sps:$4 sm:$0xff]  }
  0x3f   :  { %355 = vmatpush1.bf16.msra.mxu1 %v512_v15  ;;  %v509_v21 = vld [vmem:[#allocation5 + $0x38] sm:$0xff]   ;;  %v62_v22 = vld [vmem:[#allocation2] sm:$0xff]  ;;  %v524_v29 = vld [vmem:[#allocation7 + $0x40] ss:$8 sps:$4 sm:$0xff]  }
  0x40   :  { %356 = vmatprep.subr.bf16.mxu1 %v513_v17  ;;  %v64_v23 = vpack.c.bf16 %v62_v22, %v62_v22  ;;  %v519_v26 = vld [vmem:[#allocation7 + $0x34] ss:$8 sps:$4 sm:$0xff]   ;;  %v521_v27 = vld [vmem:[#allocation7 + $0x30] ss:$8 sps:$4 sm:$0xff]   ;;  %v528_v32 = vld [vmem:[#allocation7 + $0x64] ss:$8 sps:$4 sm:$0xff]  }
  0x41   :  { %468 = vmatpush3.bf16.msra.mxu0 %v499_v5  ;;  %v525_v30 = vld [vmem:[#allocation7 + $0x54] ss:$8 sps:$4 sm:$0xff]   ;;  %v527_v31 = vld [vmem:[#allocation7 + $0x50] ss:$8 sps:$4 sm:$0xff]   ;;  %v530_v34 = vld [vmem:[#allocation7 + $0x60] ss:$8 sps:$4 sm:$0xff]  }
  0x42   :  { %469 = vmatprep.subr.bf16.mxu0 %v500_v6  ;;  %v531_v35 = vld [vmem:[#allocation7 + $0x74] ss:$8 sps:$4 sm:$0xff]   ;;  %v533_v36 = vld [vmem:[#allocation7 + $0x70] ss:$8 sps:$4 sm:$0xff]  }
  0x43   :  { %357 = vmatpush1.bf16.msra.mxu1 %v515_v18  ;;  %v428_v38 = vld [vmem:[%s729_s2] ss:$0 sm:$0xff]  ;;  %s642_s2 = smov [#allocation8]  }
  0x44   :  { %358 = vmatprep.subr.bf16.mxu1 %v516_v24  ;;  %v262_v52 = vld [vmem:[%s731_s4] sm:$0x3]  ;;  %s418_s4 = sshll.u32 %s642_s2, 4  ;;  %s419_s4 = int_to_ptr.vmem [resolvable:$true] %s418_s4 }
  0x45   :  { %470 = vmatpush3.bf16.msra.mxu0 %v501_v7  ;;  %v267_v54 = vrot.slane %v262_v52, %v266_v51  ;;  %v271_v55 = vrot.slane %v262_v52, %v270_v53  ;;  %s606_s9 = scalar_lea.vmem %s419_s4, 128  ;;  %p611_p11 = scmp.lt.s32.totalorder %s419_s4, %s419_s4 }
  0x46   :  { %471 = vmatprep.subr.bf16.mxu0 %v502_v8  ;;  %p607_p10 = scmp.ne.s32.totalorder %s419_s4, %s606_s9  ;;  %p612_p12 = scmp.lt.s32.totalorder %s606_s9, %s606_s9 }
  0x47   :  { %359 = vmatpush1.bf16.msra.mxu1 %v518_v25 }
  0x48   :  { %360 = vmatprep.subr.bf16.mxu1 %v519_v26  ;;  %p613_p13 = por %p612_p12, %p611_p11 }
  0x49   :  { %472 = vmatpush3.bf16.msra.mxu0 %v503_v9 }
  0x4a   :  { %473 = vmatprep.subr.bf16.mxu0 %v504_v10  ;;  %p614_p0 = pnand %p613_p13, %p607_p10 }
  0x4b   :  { %361 = vmatpush1.bf16.msra.mxu1 %v521_v27 }
  0x4c   :  { %362 = vmatprep.subr.bf16.mxu1 %v522_v28 }
  0x4d   :  { %474 = vmatpush3.bf16.msra.mxu0 %v505_v12 }
  0x4e   :  { %475 = vmatprep.subr.bf16.mxu0 %v506_v16 }
  0x4f   :  { %363 = vmatpush1.bf16.msra.mxu1 %v524_v29 }
  0x50   :  { %364 = vmatprep.subr.bf16.mxu1 %v525_v30 }
  0x51   :  { %476 = vmatpush3.bf16.msra.mxu0 %v507_v19 }
  0x52   :  { %477 = vmatprep.subr.bf16.mxu0 %v508_v20 }
  0x53   :  { %365 = vmatpush1.bf16.msra.mxu1 %v527_v31 }
  0x54   :  { %366 = vmatprep.subr.bf16.mxu1 %v528_v32 }
  0x55   :  { %478 = vmatpush3.bf16.msra.mxu0 %v509_v21 }
  0x57   :  { %367 = vmatpush1.bf16.msra.mxu1 %v530_v34 }
  0x58   :  { %234 = vmatmul.mubr.bf16.vlgmr.msra.gmra.mrb[0].mxu0 %v64_v23  ;;  %368 = vmatprep.subr.bf16.mxu1 %v531_v35 }
  0x5b   :  { %369 = vmatpush1.bf16.msra.mxu1 %v533_v36 }
 0x12b   :  { %v479_v37 = vpop.f32.mrb[0].mxu0 }
 0x12c   :  { %v480_v39 = vpop.f32.mrb[1].mxu0 }
 0x12d   :  { %v481_v40 = vadd.f32 %v480_v39, %v479_v37  ;;  %v482_v41 = vpop.f32.mrb[2].mxu0 }
 0x12e   :  { %v483_v42 = vpop.f32.mrb[3].mxu0 }
 0x12f   :  { %v236_v43 = vadd.f32 %v481_v40, %v428_v38 }
 0x131   :  { %v241_v44 = vpack.c.bf16 %v236_v43, %v236_v43 }
 0x133   :  { %v242_v45 = vmul.bf16 1056980736, %v241_v44 }
 0x135   :  { %534 = vtanh.bf16 %v242_v45 }
 0x140   :  { %v535_v46 = vpop.eup %534 }
 0x141   :  { %v244_v47 = vmul.bf16 1056980736, %v535_v46 }
 0x143   :  { %v245_v48 = vadd.bf16 1056980736, %v244_v47 }
 0x145   :  { %387 = vmatmul.mubr.bf16.vlgmr.msra.gmra.mrb[0].mxu1 %v245_v48 }
 0x218   :  { %v388_v56 = vpop.f32.mrb[0].mxu1 }
 0x219   :  { %v389_v57 = vadd.f32 %v388_v56, %v267_v54  ;;  %v390_v58 = vpop.f32.mrb[1].mxu1 }
 0x21a   :  { %v391_v59 = vadd.f32 %v390_v58, %v271_v55  ;;  %v392_v60 = vpop.f32.mrb[2].mxu1 }
 0x21b   :  { %v395_v61 = vmul.f32 0.5, %v389_v57  ;;  %v393_v62 = vpop.f32.mrb[3].mxu1 }
 0x21c   :  { %v396_v63 = vmul.f32 0.5, %v391_v59 }
 0x21d   :  { %536 = vtanh.f32 %v395_v61 }
 0x21e   :  { %538 = vtanh.f32 %v396_v63 }
 0x227   :  { %v537_v0 = vpop.eup %536 }
 0x228   :  { %v539_v1 = vpop.eup %538  ;;  %v399_v2 = vmul.f32 0.5, %v537_v0 }
 0x229   :  { %v400_v3 = vmul.f32 0.5, %v539_v1 }
 0x22a   :  { %v401_v4 = vadd.f32 0.5, %v399_v2 }
 0x22b   :  { %v402_v5 = vadd.f32 0.5, %v400_v3 }
 0x22d   :  { %v462_v6 = vpack.c.bf16 %v402_v5, %v401_v4 }
 0x22f   :  { %411 = vst [vmem:[#allocation8] sm:$0xff] %v462_v6 }
 0x230   :  { %617 = shalt.err (!%p614_p0)
}
 0x231   :  { %s618_s12 = scalar_lea.hbm %s732_s5, 128 }
 0x232   :  { %p619_p1 = scmp.ne.s32.totalorder %s732_s5, %s618_s12  ;;  %p622_p2 = scmp.lt.u32.totalorder %s618_s12, %s732_s5 }
 0x234   :  { %p624_p3 = pnand %p622_p2, %p619_p1 }
 0x236   :  { %627 = shalt.err (!%p624_p3)
}
 0x237   :  { %421 = dma.vmem_to_hbm [thread:$0]  %s419_s4, 128, %s732_s5, [#allocation4]  }
 0x238   :  { %632 = dma.done.wait [#allocation4], 128  }
 0x239   :  { %633 = vsyncadd [#allocation4], 4294967168 }
 0x23a   :  { %425 = vsyncpa [#allocation3], 1 }
 0x23b   :  { %426 = vsyncpa [#allocation6], 1 }
 0x23c   :  { %427 = vsyncpa [#allocation4], 1 }

</bundles_post_ra>
